<compile_context>
chip_gen: v7x
topology: tpu7x:2x2x1
jax: 0.10.0
libtpu: 0.0.40
codegen_flags: <defaults>
</compile_context>

<pallas_src>
import functools

import jax
import jax.numpy as jnp
from jax import lax
from jax.experimental import pallas as pl
from jax.experimental.pallas import tpu as pltpu


# ---------------------------------------------------------------------------
# Fused kernel: conv3x3 s2 p1 + ReLU + all 1x1 decoders + bilinear resize
# ---------------------------------------------------------------------------
def _fused_forward_kernel(xph_ref, wcat_ref, bbbt_ref, ah2_ref, mdec_ref, bdect_ref,
                          o_ref, *, Nb, Ho, Wo, Cin, Chid):
    # xph_ref block: (Nb, 4, Ho+1, (Wo+1)*Cin), bf16.  Phase ph = 2p+q holds the padded
    # input at rows 2a+p, cols 2b+q, so every conv tap (kh, kw) is a unit-stride slice.
    # Assemble the (Nb*Ho, 9*Wo*Cin) tap slab with static slices + concats.
    rows = []
    for i in range(Nb):
        taps = []
        for kh in range(3):
            for kw in range(3):
                ph = 2 * (kh % 2) + (kw % 2)
                dh, dw = kh // 2, kw // 2
                taps.append(xph_ref[i, ph, dh:dh + Ho, dw * Cin:(dw + Wo) * Cin])
        rows.append(jnp.concatenate(taps, axis=-1))               # (Ho, 9*Wo*Cin)
    slab = jnp.concatenate(rows, axis=0)                          # (Nb*Ho, 9*Wo*Cin) bf16

    # Shared encoder: ONE K = 9*Wo*Cin matmul, bias + ReLU.
    shared = jnp.dot(slab, wcat_ref[...], preferred_element_type=jnp.float32)
    shared = jnp.maximum(shared + bbbt_ref[...], 0.0)             # (Nb*Ho, Wo*Chid) f32

    # Fused [all-task 1x1 decoders (x) width bilinear] at Ho rows (reordered tail).
    dec = jnp.dot(shared.astype(jnp.bfloat16), mdec_ref[...],
                  preferred_element_type=jnp.float32) + bdect_ref[...]   # (Nb*Ho, W*Ct)

    # Height bilinear resize per image; even/odd output rows folded into lanes so the
    # store is a full 128-lane slab.
    ah_even = ah2_ref[0]                                          # (H//2, Ho) bf16
    ah_odd = ah2_ref[1]
    for i in range(Nb):
        dec_i = dec[i * Ho:(i + 1) * Ho, :].astype(jnp.bfloat16)
        even = jnp.dot(ah_even, dec_i, preferred_element_type=jnp.float32)
        odd = jnp.dot(ah_odd, dec_i, preferred_element_type=jnp.float32)
        o_ref[i] = jnp.concatenate([even, odd], axis=-1).astype(o_ref.dtype)


# ---------------------------------------------------------------------------
# Host-side constant construction (hoisted out of the per-forward path)
# ---------------------------------------------------------------------------
def bilinear_matrix(in_size, out_size):
    """Row-stochastic (out_size, in_size) matrix matching F.interpolate bilinear,
    align_corners=False (PyTorch default)."""
    scale = in_size / out_size
    dst = jnp.arange(out_size, dtype=jnp.float32)
    src = (dst + 0.5) * scale - 0.5
    src = jnp.clip(src, 0.0, float(in_size - 1))
    i0 = jnp.floor(src).astype(jnp.int32)
    i1 = jnp.minimum(i0 + 1, in_size - 1)
    frac = src - i0.astype(jnp.float32)
    rows = jnp.arange(out_size)
    m = jnp.zeros((out_size, in_size), jnp.float32)
    m = m.at[rows, i0].add(1.0 - frac)
    m = m.at[rows, i1].add(frac)
    return m


def init_params(key, cin, chid, task_channels):
    """Backbone conv weight stored tap-major (9, Cin, Chid) with tap = kh*3 + kw
    (i.e. PyTorch weight[cout, cin, kh, kw] -> w_bb[kh*3+kw, cin, cout])."""
    ks = jax.random.split(key, 2 + 2 * len(task_channels))
    params = {
        "w_bb": 0.1 * jax.random.normal(ks[0], (9, cin, chid), jnp.float32),
        "b_bb": 0.1 * jax.random.normal(ks[1], (1, chid), jnp.float32),
        "dec": {},
    }
    for i, (task, ct) in enumerate(task_channels):
        wd = 0.1 * jax.random.normal(ks[2 + 2 * i], (chid, ct), jnp.float32)
        bd = 0.1 * jax.random.normal(ks[3 + 2 * i], (1, ct), jnp.float32)
        params["dec"][task] = (wd, bd)
    return params


def prepare_fused_operands(params, input_hw, task_channels):
    """Build the weight-side kernel operands once (depend only on params & H, W)."""
    H, W = input_hw
    assert H % 2 == 0, "two-row output fold assumes even H"
    Ho, Wo = (H - 1) // 2 + 1, (W - 1) // 2 + 1          # conv k3 s2 p1 output size
    n_taps, Cin, Chid = params["w_bb"].shape

    # Concatenate all task decoders -> one (Chid, sum Ct) 1x1-conv weight / bias.
    wdec = jnp.concatenate([params["dec"][t][0] for t, _ in task_channels], axis=1)
    bdec = jnp.concatenate([params["dec"][t][1] for t, _ in task_channels], axis=1)

    # Conv weights as Wo-block-diagonal matrices, then all 9 taps stacked along K:
    # (9*Wo*Cin, Wo*Chid).  Valid while W stays within one MXU tile (see header note).
    eye_w = jnp.eye(Wo, dtype=jnp.float32)
    w_blk = jnp.einsum("wv,tik->twivk", eye_w, params["w_bb"]).reshape(
        n_taps, Wo * Cin, Wo * Chid)
    w_cat = w_blk.reshape(n_taps * Wo * Cin, Wo * Chid)
    bbb_t = jnp.tile(params["b_bb"], (1, Wo))            # (1, Wo*Chid)

    ah = bilinear_matrix(Ho, H)                          # (H, Ho)
    ah2 = jnp.stack([ah[0::2], ah[1::2]], axis=0)        # (2, H//2, Ho) even/odd rows
    aw = bilinear_matrix(Wo, W)                          # (W, Wo)

    # Fused [all decoders (x) width-resize]: m_dec[w*Chid+k, J*Ct+c] = Aw[J,w]*wdec[k,c]
    m_dec = jnp.einsum("Jw,kc->wkJc", aw, wdec).reshape(Wo * Chid, W * wdec.shape[1])
    bdec_t = jnp.tile(bdec, (1, W))                      # (1, W*Ct)

    # bf16 matmul operands (f32 accumulation in-kernel); biases stay f32.
    return {
        "w_cat": w_cat.astype(jnp.bfloat16),
        "bbb_t": bbb_t,
        "ah2": ah2.astype(jnp.bfloat16),
        "m_dec": m_dec.astype(jnp.bfloat16),
        "bdec_t": bdec_t,
    }


# ---------------------------------------------------------------------------
# Forward pass (mirrors MultiTaskModel.forward)
# ---------------------------------------------------------------------------
def multi_task_forward(x_nchw, fused, task_channels, nb_max=8):
    N, Cin, H, W = x_nchw.shape
    Ho, Wo = (H - 1) // 2 + 1, (W - 1) // 2 + 1
    Hp, Wp = Ho + 1, Wo + 1
    Chid = fused["bbb_t"].shape[1] // Wo
    Ct = fused["bdec_t"].shape[1] // W

    # Images per grid step: largest divisor of N <= nb_max (raise nb_max to 16/32 on
    # v6e/v7x for real batches; keep N//Nb a multiple of 2 on v7x so both TCs work).
    Nb = max(d for d in range(1, min(N, nb_max) + 1) if N % d == 0)

    # Layout prep only (no compute): NCHW->NHWC, conv padding (+1 extra so all four
    # parity phases share one shape), parity split, flatten (w, c) into lanes, bf16.
    x_nhwc = jnp.transpose(x_nchw, (0, 2, 3, 1))
    xp = jnp.pad(x_nhwc, ((0, 0), (1, 2), (1, 2), (0, 0)))
    phases = [xp[:, p:p + 2 * Hp:2, q:q + 2 * Wp:2, :]
              for p in range(2) for q in range(2)]            # each (N, Hp, Wp, Cin)
    xph = jnp.stack(phases, axis=1).reshape(N, 4, Hp, Wp * Cin).astype(jnp.bfloat16)

    kern = functools.partial(_fused_forward_kernel,
                             Nb=Nb, Ho=Ho, Wo=Wo, Cin=Cin, Chid=Chid)
    out_fold = pl.pallas_call(
        kern,
        out_shape=jax.ShapeDtypeStruct((N, H // 2, 2 * W * Ct), jnp.float32),
        grid=(N // Nb,),
        in_specs=[
            pl.BlockSpec((Nb, 4, Hp, Wp * Cin), lambda n: (n, 0, 0, 0)),
            pl.BlockSpec((9 * Wo * Cin, Wo * Chid), lambda n: (0, 0)),
            pl.BlockSpec((1, Wo * Chid), lambda n: (0, 0)),
            pl.BlockSpec((2, H // 2, Ho), lambda n: (0, 0, 0)),
            pl.BlockSpec((Wo * Chid, W * Ct), lambda n: (0, 0)),
            pl.BlockSpec((1, W * Ct), lambda n: (0, 0)),
        ],
        out_specs=pl.BlockSpec((Nb, H // 2, 2 * W * Ct), lambda n: (n, 0, 0)),
        compiler_params=pltpu.CompilerParams(
            dimension_semantics=("parallel",),
            vmem_limit_bytes=32 * 1024 * 1024),
    )(xph, fused["w_cat"], fused["bbb_t"], fused["ah2"], fused["m_dec"], fused["bdec_t"])

    # Undo the lane fold: (N, H/2, [row2j | row2j+1]) -> (N, H, W, Ct) -> per-task NCHW.
    full = out_fold.reshape(N, H // 2, 2, W, Ct).reshape(N, H, W, Ct)
    full = jnp.transpose(full, (0, 3, 1, 2))
    outs, off = {}, 0
    for task, ct in task_channels:
        outs[task] = full[:, off:off + ct]
        off += ct
    return outs


# ---------------------------------------------------------------------------
# Independent plain-JAX reference (XLA conv + matrix bilinear) for validation
# ---------------------------------------------------------------------------
def reference_forward(x_nchw, params, task_channels):
    N, Cin, H, W = x_nchw.shape
    Ho, Wo = (H - 1) // 2 + 1, (W - 1) // 2 + 1
    x_nhwc = jnp.transpose(x_nchw, (0, 2, 3, 1)).astype(jnp.float32)
    w_hwio = params["w_bb"].reshape(3, 3, Cin, -1)
    shared = lax.conv_general_dilated(
        x_nhwc, w_hwio, window_strides=(2, 2), padding=((1, 1), (1, 1)),
        dimension_numbers=("NHWC", "HWIO", "NHWC"))
    shared = jnp.maximum(shared + params["b_bb"].reshape(1, 1, 1, -1), 0.0)
    ah = bilinear_matrix(Ho, H)
    aw = bilinear_matrix(Wo, W)
    outs = {}
    for task, _ in task_channels:
        wd, bd = params["dec"][task]
        logits = jnp.einsum("nhwk,kc->nhwc", shared, wd) + bd.reshape(1, 1, 1, -1)
        up = jnp.einsum("Hh,Ww,nhwc->nHWc", ah, aw, logits)
        outs[task] = jnp.transpose(up, (0, 3, 1, 2))
    return outs


if __name__ == "__main__":
    key = jax.random.PRNGKey(0)
    k_x, k_p = jax.random.split(key)

    N, Cin, H, W = 2, 4, 16, 16
    Chid = 8
    task_channels = (("seg", 3), ("depth", 1))

    x = jax.random.normal(k_x, (N, Cin, H, W), jnp.float32)
    params = init_params(k_p, Cin, Chid, task_channels)

    # one-time operand construction (hoisted out of the per-call path)
    fused = prepare_fused_operands(params, (H, W), task_channels)
    fused = jax.tree_util.tree_map(jax.block_until_ready, fused)

    fwd = jax.jit(functools.partial(multi_task_forward, task_channels=task_channels))
    outs = fwd(x, fused)
    outs = jax.tree_util.tree_map(jax.block_until_ready, outs)

    ref = reference_forward(x, params, task_channels)
    for task, ct in task_channels:
        assert outs[task].shape == (N, ct, H, W), outs[task].shape
        assert bool(jnp.all(jnp.isfinite(outs[task])))
        err = float(jnp.max(jnp.abs(outs[task] - ref[task])))
        # bf16 MXU operands vs f32 reference: expected max-abs error ~1e-3..1e-2.
        assert err < 3e-2, (task, err)
    print("KERNEL_OK")
</pallas_src>

<mosaic_0001>
module attributes {stable_mosaic.version = 11 : i64} {
  func.func @_fused_forward_kernel(%arg0: i32, %arg1: memref<2x4x9x36xbf16, #tpu.memory_space<vmem>>, %arg2: memref<288x64xbf16, #tpu.memory_space<vmem>>, %arg3: memref<1x64xf32, #tpu.memory_space<vmem>>, %arg4: memref<2x8x8xbf16, #tpu.memory_space<vmem>>, %arg5: memref<64x64xbf16, #tpu.memory_space<vmem>>, %arg6: memref<1x64xf32, #tpu.memory_space<vmem>>, %arg7: memref<2x8x128xf32, #tpu.memory_space<vmem>>) attributes {dimension_semantics = [#tpu.dimension_semantics<parallel>], iteration_bounds = array<i64: 1>, scalar_prefetch = 0 : i64, scratch_operands = 0 : i64, tpu.core_type = #tpu.core_type<tc>, window_params = [{transform_indices = @transform_0, window_bounds = array<i64: 2, 4, 9, 36>}, {pipeline_mode = #tpu.pipeline_mode<synchronous>, transform_indices = @transform_1, window_bounds = array<i64: 288, 64>}, {pipeline_mode = #tpu.pipeline_mode<synchronous>, transform_indices = @transform_2, window_bounds = array<i64: 1, 64>}, {pipeline_mode = #tpu.pipeline_mode<synchronous>, transform_indices = @transform_3, window_bounds = array<i64: 2, 8, 8>}, {pipeline_mode = #tpu.pipeline_mode<synchronous>, transform_indices = @transform_4, window_bounds = array<i64: 64, 64>}, {pipeline_mode = #tpu.pipeline_mode<synchronous>, transform_indices = @transform_5, window_bounds = array<i64: 1, 64>}, {transform_indices = @transform_6, window_bounds = array<i64: 2, 8, 128>}]} {
    %c0 = arith.constant 0 : index
    %c0_0 = arith.constant 0 : index
    %c0_1 = arith.constant 0 : index
    %c0_2 = arith.constant 0 : index
    %0 = vector.load %arg1[%c0, %c0_0, %c0_1, %c0_2] : memref<2x4x9x36xbf16, #tpu.memory_space<vmem>>, vector<1x1x8x32xbf16>
    %1 = vector.shape_cast %0 : vector<1x1x8x32xbf16> to vector<8x32xbf16>
    %c0_3 = arith.constant 0 : index
    %c1 = arith.constant 1 : index
    %c0_4 = arith.constant 0 : index
    %c0_5 = arith.constant 0 : index
    %2 = vector.load %arg1[%c0_3, %c1, %c0_4, %c0_5] : memref<2x4x9x36xbf16, #tpu.memory_space<vmem>>, vector<1x1x8x32xbf16>
    %3 = vector.shape_cast %2 : vector<1x1x8x32xbf16> to vector<8x32xbf16>
    %c0_6 = arith.constant 0 : index
    %c0_7 = arith.constant 0 : index
    %c0_8 = arith.constant 0 : index
    %c4 = arith.constant 4 : index
    %4 = vector.load %arg1[%c0_6, %c0_7, %c0_8, %c4] : memref<2x4x9x36xbf16, #tpu.memory_space<vmem>>, vector<1x1x8x32xbf16>
    %5 = vector.shape_cast %4 : vector<1x1x8x32xbf16> to vector<8x32xbf16>
    %c0_9 = arith.constant 0 : index
    %c2 = arith.constant 2 : index
    %c0_10 = arith.constant 0 : index
    %c0_11 = arith.constant 0 : index
    %6 = vector.load %arg1[%c0_9, %c2, %c0_10, %c0_11] : memref<2x4x9x36xbf16, #tpu.memory_space<vmem>>, vector<1x1x8x32xbf16>
    %7 = vector.shape_cast %6 : vector<1x1x8x32xbf16> to vector<8x32xbf16>
    %c0_12 = arith.constant 0 : index
    %c3 = arith.constant 3 : index
    %c0_13 = arith.constant 0 : index
    %c0_14 = arith.constant 0 : index
    %8 = vector.load %arg1[%c0_12, %c3, %c0_13, %c0_14] : memref<2x4x9x36xbf16, #tpu.memory_space<vmem>>, vector<1x1x8x32xbf16>
    %9 = vector.shape_cast %8 : vector<1x1x8x32xbf16> to vector<8x32xbf16>
    %c0_15 = arith.constant 0 : index
    %c2_16 = arith.constant 2 : index
    %c0_17 = arith.constant 0 : index
    %c4_18 = arith.constant 4 : index
    %10 = vector.load %arg1[%c0_15, %c2_16, %c0_17, %c4_18] : memref<2x4x9x36xbf16, #tpu.memory_space<vmem>>, vector<1x1x8x32xbf16>
    %11 = vector.shape_cast %10 : vector<1x1x8x32xbf16> to vector<8x32xbf16>
    %c0_19 = arith.constant 0 : index
    %c0_20 = arith.constant 0 : index
    %c1_21 = arith.constant 1 : index
    %c0_22 = arith.constant 0 : index
    %12 = vector.load %arg1[%c0_19, %c0_20, %c1_21, %c0_22] : memref<2x4x9x36xbf16, #tpu.memory_space<vmem>>, vector<1x1x8x32xbf16>
    %13 = vector.shape_cast %12 : vector<1x1x8x32xbf16> to vector<8x32xbf16>
    %c0_23 = arith.constant 0 : index
    %c1_24 = arith.constant 1 : index
    %c1_25 = arith.constant 1 : index
    %c0_26 = arith.constant 0 : index
    %14 = vector.load %arg1[%c0_23, %c1_24, %c1_25, %c0_26] : memref<2x4x9x36xbf16, #tpu.memory_space<vmem>>, vector<1x1x8x32xbf16>
    %15 = vector.shape_cast %14 : vector<1x1x8x32xbf16> to vector<8x32xbf16>
    %c0_27 = arith.constant 0 : index
    %c0_28 = arith.constant 0 : index
    %c1_29 = arith.constant 1 : index
    %c4_30 = arith.constant 4 : index
    %16 = vector.load %arg1[%c0_27, %c0_28, %c1_29, %c4_30] : memref<2x4x9x36xbf16, #tpu.memory_space<vmem>>, vector<1x1x8x32xbf16>
    %17 = vector.shape_cast %16 : vector<1x1x8x32xbf16> to vector<8x32xbf16>
    %18 = tpu.concatenate %1, %3, %5, %7, %9, %11, %13, %15, %17 in 1 : vector<8x32xbf16>, vector<8x32xbf16>, vector<8x32xbf16>, vector<8x32xbf16>, vector<8x32xbf16>, vector<8x32xbf16>, vector<8x32xbf16>, vector<8x32xbf16>, vector<8x32xbf16> -> vector<8x288xbf16>
    %c1_31 = arith.constant 1 : index
    %c0_32 = arith.constant 0 : index
    %c0_33 = arith.constant 0 : index
    %c0_34 = arith.constant 0 : index
    %19 = vector.load %arg1[%c1_31, %c0_32, %c0_33, %c0_34] : memref<2x4x9x36xbf16, #tpu.memory_space<vmem>>, vector<1x1x8x32xbf16>
    %20 = vector.shape_cast %19 : vector<1x1x8x32xbf16> to vector<8x32xbf16>
    %c1_35 = arith.constant 1 : index
    %c1_36 = arith.constant 1 : index
    %c0_37 = arith.constant 0 : index
    %c0_38 = arith.constant 0 : index
    %21 = vector.load %arg1[%c1_35, %c1_36, %c0_37, %c0_38] : memref<2x4x9x36xbf16, #tpu.memory_space<vmem>>, vector<1x1x8x32xbf16>
    %22 = vector.shape_cast %21 : vector<1x1x8x32xbf16> to vector<8x32xbf16>
    %c1_39 = arith.constant 1 : index
    %c0_40 = arith.constant 0 : index
    %c0_41 = arith.constant 0 : index
    %c4_42 = arith.constant 4 : index
    %23 = vector.load %arg1[%c1_39, %c0_40, %c0_41, %c4_42] : memref<2x4x9x36xbf16, #tpu.memory_space<vmem>>, vector<1x1x8x32xbf16>
    %24 = vector.shape_cast %23 : vector<1x1x8x32xbf16> to vector<8x32xbf16>
    %c1_43 = arith.constant 1 : index
    %c2_44 = arith.constant 2 : index
    %c0_45 = arith.constant 0 : index
    %c0_46 = arith.constant 0 : index
    %25 = vector.load %arg1[%c1_43, %c2_44, %c0_45, %c0_46] : memref<2x4x9x36xbf16, #tpu.memory_space<vmem>>, vector<1x1x8x32xbf16>
    %26 = vector.shape_cast %25 : vector<1x1x8x32xbf16> to vector<8x32xbf16>
    %c1_47 = arith.constant 1 : index
    %c3_48 = arith.constant 3 : index
    %c0_49 = arith.constant 0 : index
    %c0_50 = arith.constant 0 : index
    %27 = vector.load %arg1[%c1_47, %c3_48, %c0_49, %c0_50] : memref<2x4x9x36xbf16, #tpu.memory_space<vmem>>, vector<1x1x8x32xbf16>
    %28 = vector.shape_cast %27 : vector<1x1x8x32xbf16> to vector<8x32xbf16>
    %c1_51 = arith.constant 1 : index
    %c2_52 = arith.constant 2 : index
    %c0_53 = arith.constant 0 : index
    %c4_54 = arith.constant 4 : index
    %29 = vector.load %arg1[%c1_51, %c2_52, %c0_53, %c4_54] : memref<2x4x9x36xbf16, #tpu.memory_space<vmem>>, vector<1x1x8x32xbf16>
    %30 = vector.shape_cast %29 : vector<1x1x8x32xbf16> to vector<8x32xbf16>
    %c1_55 = arith.constant 1 : index
    %c0_56 = arith.constant 0 : index
    %c1_57 = arith.constant 1 : index
    %c0_58 = arith.constant 0 : index
    %31 = vector.load %arg1[%c1_55, %c0_56, %c1_57, %c0_58] : memref<2x4x9x36xbf16, #tpu.memory_space<vmem>>, vector<1x1x8x32xbf16>
    %32 = vector.shape_cast %31 : vector<1x1x8x32xbf16> to vector<8x32xbf16>
    %c1_59 = arith.constant 1 : index
    %c1_60 = arith.constant 1 : index
    %c1_61 = arith.constant 1 : index
    %c0_62 = arith.constant 0 : index
    %33 = vector.load %arg1[%c1_59, %c1_60, %c1_61, %c0_62] : memref<2x4x9x36xbf16, #tpu.memory_space<vmem>>, vector<1x1x8x32xbf16>
    %34 = vector.shape_cast %33 : vector<1x1x8x32xbf16> to vector<8x32xbf16>
    %c1_63 = arith.constant 1 : index
    %c0_64 = arith.constant 0 : index
    %c1_65 = arith.constant 1 : index
    %c4_66 = arith.constant 4 : index
    %35 = vector.load %arg1[%c1_63, %c0_64, %c1_65, %c4_66] : memref<2x4x9x36xbf16, #tpu.memory_space<vmem>>, vector<1x1x8x32xbf16>
    %36 = vector.shape_cast %35 : vector<1x1x8x32xbf16> to vector<8x32xbf16>
    %37 = tpu.concatenate %20, %22, %24, %26, %28, %30, %32, %34, %36 in 1 : vector<8x32xbf16>, vector<8x32xbf16>, vector<8x32xbf16>, vector<8x32xbf16>, vector<8x32xbf16>, vector<8x32xbf16>, vector<8x32xbf16>, vector<8x32xbf16>, vector<8x32xbf16> -> vector<8x288xbf16>
    %38 = tpu.concatenate %18, %37 in 0 : vector<8x288xbf16>, vector<8x288xbf16> -> vector<16x288xbf16>
    %c0_67 = arith.constant 0 : index
    %c0_68 = arith.constant 0 : index
    %39 = vector.load %arg2[%c0_67, %c0_68] : memref<288x64xbf16, #tpu.memory_space<vmem>>, vector<288x64xbf16>
    %cst = arith.constant dense<0.000000e+00> : vector<16x64xf32>
    %40 = tpu.matmul %38, %39, %cst {dimension_numbers = #tpu.dot_dimension_numbers<[1], [0], [0], [1], [0, 0, 1, 1], [], []>} : vector<16x288xbf16>, vector<288x64xbf16>, vector<16x64xf32> -> vector<16x64xf32>
    %c0_69 = arith.constant 0 : index
    %c0_70 = arith.constant 0 : index
    %41 = vector.load %arg3[%c0_69, %c0_70] : memref<1x64xf32, #tpu.memory_space<vmem>>, vector<1x64xf32>
    %42 = vector.broadcast %41 : vector<1x64xf32> to vector<16x64xf32>
    %43 = arith.addf %40, %42 : vector<16x64xf32>
    %cst_71 = arith.constant 0.000000e+00 : f32
    %44 = vector.broadcast %cst_71 : f32 to vector<16x64xf32>
    %45 = arith.maximumf %43, %44 : vector<16x64xf32>
    %46 = arith.truncf %45 : vector<16x64xf32> to vector<16x64xbf16>
    %c0_72 = arith.constant 0 : index
    %c0_73 = arith.constant 0 : index
    %47 = vector.load %arg5[%c0_72, %c0_73] : memref<64x64xbf16, #tpu.memory_space<vmem>>, vector<64x64xbf16>
    %cst_74 = arith.constant dense<0.000000e+00> : vector<16x64xf32>
    %48 = tpu.matmul %46, %47, %cst_74 {dimension_numbers = #tpu.dot_dimension_numbers<[1], [0], [0], [1], [0, 0, 1, 1], [], []>} : vector<16x64xbf16>, vector<64x64xbf16>, vector<16x64xf32> -> vector<16x64xf32>
    %c0_75 = arith.constant 0 : index
    %c0_76 = arith.constant 0 : index
    %49 = vector.load %arg6[%c0_75, %c0_76] : memref<1x64xf32, #tpu.memory_space<vmem>>, vector<1x64xf32>
    %50 = vector.broadcast %49 : vector<1x64xf32> to vector<16x64xf32>
    %51 = arith.addf %48, %50 : vector<16x64xf32>
    %c0_77 = arith.constant 0 : index
    %c0_78 = arith.constant 0 : index
    %c0_79 = arith.constant 0 : index
    %52 = vector.load %arg4[%c0_77, %c0_78, %c0_79] : memref<2x8x8xbf16, #tpu.memory_space<vmem>>, vector<1x8x8xbf16>
    %53 = vector.shape_cast %52 : vector<1x8x8xbf16> to vector<8x8xbf16>
    %c1_80 = arith.constant 1 : index
    %c0_81 = arith.constant 0 : index
    %c0_82 = arith.constant 0 : index
    %54 = vector.load %arg4[%c1_80, %c0_81, %c0_82] : memref<2x8x8xbf16, #tpu.memory_space<vmem>>, vector<1x8x8xbf16>
    %55 = vector.shape_cast %54 : vector<1x8x8xbf16> to vector<8x8xbf16>
    %56 = vector.extract_strided_slice %51 {offsets = [0, 0], sizes = [8, 64], strides = [1, 1]} : vector<16x64xf32> to vector<8x64xf32>
    %57 = arith.truncf %56 : vector<8x64xf32> to vector<8x64xbf16>
    %cst_83 = arith.constant dense<0.000000e+00> : vector<8x64xf32>
    %58 = tpu.matmul %53, %57, %cst_83 {dimension_numbers = #tpu.dot_dimension_numbers<[1], [0], [0], [1], [0, 0, 1, 1], [], []>} : vector<8x8xbf16>, vector<8x64xbf16>, vector<8x64xf32> -> vector<8x64xf32>
    %cst_84 = arith.constant dense<0.000000e+00> : vector<8x64xf32>
    %59 = tpu.matmul %55, %57, %cst_84 {dimension_numbers = #tpu.dot_dimension_numbers<[1], [0], [0], [1], [0, 0, 1, 1], [], []>} : vector<8x8xbf16>, vector<8x64xbf16>, vector<8x64xf32> -> vector<8x64xf32>
    %60 = tpu.concatenate %58, %59 in 1 : vector<8x64xf32>, vector<8x64xf32> -> vector<8x128xf32>
    %c0_85 = arith.constant 0 : index
    %c0_86 = arith.constant 0 : index
    %c0_87 = arith.constant 0 : index
    %61 = vector.load %arg7[%c0_85, %c0_86, %c0_87] : memref<2x8x128xf32, #tpu.memory_space<vmem>>, vector<1x8x128xf32>
    %62 = vector.shape_cast %61 : vector<1x8x128xf32> to vector<8x128xf32>
    %63 = vector.shape_cast %60 : vector<8x128xf32> to vector<1x8x128xf32>
    tpu.vector_store %arg7[%c0_85, %c0_86, %c0_87], %63 {strides = array<i32>} : memref<2x8x128xf32, #tpu.memory_space<vmem>>, vector<1x8x128xf32>,
    %64 = vector.extract_strided_slice %51 {offsets = [8, 0], sizes = [8, 64], strides = [1, 1]} : vector<16x64xf32> to vector<8x64xf32>
    %65 = arith.truncf %64 : vector<8x64xf32> to vector<8x64xbf16>
    %cst_88 = arith.constant dense<0.000000e+00> : vector<8x64xf32>
    %66 = tpu.matmul %53, %65, %cst_88 {dimension_numbers = #tpu.dot_dimension_numbers<[1], [0], [0], [1], [0, 0, 1, 1], [], []>} : vector<8x8xbf16>, vector<8x64xbf16>, vector<8x64xf32> -> vector<8x64xf32>
    %cst_89 = arith.constant dense<0.000000e+00> : vector<8x64xf32>
    %67 = tpu.matmul %55, %65, %cst_89 {dimension_numbers = #tpu.dot_dimension_numbers<[1], [0], [0], [1], [0, 0, 1, 1], [], []>} : vector<8x8xbf16>, vector<8x64xbf16>, vector<8x64xf32> -> vector<8x64xf32>
    %68 = tpu.concatenate %66, %67 in 1 : vector<8x64xf32>, vector<8x64xf32> -> vector<8x128xf32>
    %c1_90 = arith.constant 1 : index
    %c0_91 = arith.constant 0 : index
    %c0_92 = arith.constant 0 : index
    %69 = vector.load %arg7[%c1_90, %c0_91, %c0_92] : memref<2x8x128xf32, #tpu.memory_space<vmem>>, vector<1x8x128xf32>
    %70 = vector.shape_cast %69 : vector<1x8x128xf32> to vector<8x128xf32>
    %71 = vector.shape_cast %68 : vector<8x128xf32> to vector<1x8x128xf32>
    tpu.vector_store %arg7[%c1_90, %c0_91, %c0_92], %71 {strides = array<i32>} : memref<2x8x128xf32, #tpu.memory_space<vmem>>, vector<1x8x128xf32>,
    return
  }
  func.func @transform_0(%arg0: i32) -> (i32, i32, i32, i32) {
    %c0_i32 = arith.constant 0 : i32
    %c0_i32_0 = arith.constant 0 : i32
    %c0_i32_1 = arith.constant 0 : i32
    %c0_i32_2 = arith.constant 0 : i32
    return %arg0, %c0_i32, %c0_i32_0, %c0_i32_1 : i32, i32, i32, i32
  }
  func.func @transform_1(%arg0: i32) -> (i32, i32) {
    %c0_i32 = arith.constant 0 : i32
    %c0_i32_0 = arith.constant 0 : i32
    %c0_i32_1 = arith.constant 0 : i32
    return %c0_i32, %c0_i32_0 : i32, i32
  }
  func.func @transform_2(%arg0: i32) -> (i32, i32) {
    %c0_i32 = arith.constant 0 : i32
    %c0_i32_0 = arith.constant 0 : i32
    %c0_i32_1 = arith.constant 0 : i32
    return %c0_i32, %c0_i32_0 : i32, i32
  }
  func.func @transform_3(%arg0: i32) -> (i32, i32, i32) {
    %c0_i32 = arith.constant 0 : i32
    %c0_i32_0 = arith.constant 0 : i32
    %c0_i32_1 = arith.constant 0 : i32
    %c0_i32_2 = arith.constant 0 : i32
    return %c0_i32, %c0_i32_0, %c0_i32_1 : i32, i32, i32
  }
  func.func @transform_4(%arg0: i32) -> (i32, i32) {
    %c0_i32 = arith.constant 0 : i32
    %c0_i32_0 = arith.constant 0 : i32
    %c0_i32_1 = arith.constant 0 : i32
    return %c0_i32, %c0_i32_0 : i32, i32
  }
  func.func @transform_5(%arg0: i32) -> (i32, i32) {
    %c0_i32 = arith.constant 0 : i32
    %c0_i32_0 = arith.constant 0 : i32
    %c0_i32_1 = arith.constant 0 : i32
    return %c0_i32, %c0_i32_0 : i32, i32
  }
  func.func @transform_6(%arg0: i32) -> (i32, i32, i32) {
    %c0_i32 = arith.constant 0 : i32
    %c0_i32_0 = arith.constant 0 : i32
    %c0_i32_1 = arith.constant 0 : i32
    return %arg0, %c0_i32, %c0_i32_0 : i32, i32, i32
  }
}

</mosaic_0001>

<bundles_post_ra>
// kernel: multi_task_forward.1
= control target key start
LH: loop header
LB: loop body
LE: loop exit
PB: predicated region body
PF: predicated region fallthrough
CT: control target
= control target key end

     0   :  { %s865_s29 = smov 28   ;;  %s866_s18 = smov 32   ;;  %v869_v34 = vmov 0.0   ;;  %vm871_vm0 = vmmov 0   ;;  %vm76_vm1 = vcmask 261120   ;;  %vm80_vm2 = vcmask 523264   ;;  %s1095_s0 = inlined_call_operand.vmem [shape: bf16[2,4,9,36], index: 0, kind: input, shape index: {}]   ;;  %s1096_s1 = inlined_call_operand.vmem [shape: bf16[288,64], index: 1, kind: input, shape index: {}]   ;;  %s1097_s4 = inlined_call_operand.vmem [shape: bf16[64,64], index: 4, kind: input, shape index: {}]   ;;  %s1098_s2 = inlined_call_operand.vmem [shape: f32[1,64], index: 2, kind: input, shape index: {}]   ;;  %s1099_s5 = inlined_call_operand.vmem [shape: f32[1,64], index: 5, kind: input, shape index: {}]   ;;  %s1100_s3 = inlined_call_operand.vmem [shape: bf16[2,8,8], index: 3, kind: input, shape index: {}]   ;;  %s1101_s6 = inlined_call_operand.vmem [shape: f32[2,8,128], index: 6, kind: output, shape index: {}]  }
   0x1   :  { %v833_v0 = vld [vmem:[%s1095_s0 + $0x30] ss:$0 sps:$4 sm:$0xff]   ;;  %v701_v2 = vld [vmem:[%s1095_s0 + $0x28] sm:$0xf]  ;;  %v705_v3 = vld [vmem:[%s1095_s0 + $0x2c] sm:$0x1]  ;;  %781 = vmatprep.subr.bf16.mxu1 %v869_v34  ;;  %785 = vmatprep.mubr.msk.bf16.mxu1 %vm871_vm0, %v869_v34 }
   0x2   :  { %v914_v1 = vld [vmem:[%s1095_s0 + $0x10] ss:$0 sps:$4 sm:$0xff]   ;;  %118 = vrot.lane.b32.xlu0 %v833_v0, %s865_s29  ;;  %v706_v4 = vcombine.low %v701_v2, %v701_v2  ;;  %v710_v5 = vcombine.low %v701_v2, %v705_v3  ;;  %v925_v6 = vld [vmem:[%s1095_s0 + $0x20] sm:$0xf]  ;;  %v704_v7 = vld [vmem:[%s1095_s0 + $0x24] sm:$0x1] }
   0x3   :  { %48 = vrot.lane.b32.xlu1 %v914_v1, %s865_s29  ;;  %v709_v8 = vcombine.low %v925_v6, %v704_v7  ;;  %v691_v9 = vld [vmem:[%s1095_s0 + $0x8] sm:$0xf]  ;;  %v694_v10 = vld [vmem:[%s1095_s0 + $0xc] sm:$0x1]  ;;  %v941_v12 = vld [vmem:[%s1095_s0] sm:$0xf]  ;;  %v707_v18 = vcombine.low %v925_v6, %v925_v6 }
   0x4   :  { %v138_v11 = vshll.u32 %v710_v5, 16  ;;  %v31_v13 = vld [vmem:[%s1095_s0 + $0x4] sm:$0x1]  ;;  %v699_v16 = vcombine.low %v691_v9, %v694_v10  ;;  %v136_v19 = vshrl.u32 %v710_v5, 16  ;;  %v845_v25 = vld [vmem:[%s1096_s1 + $0x48] sm:$0xff]   ;;  %s867_s27 = smov 60   ;;  %v695_v29 = vcombine.low %v691_v9, %v691_v9 }
   0x5   :  { %v124_v14 = vshrl.u32 %v709_v8, 16  ;;  %v126_v15 = vshll.u32 %v709_v8, 16  ;;  %v698_v17 = vcombine.low %v941_v12, %v31_v13  ;;  %v843_v20 = vld [vmem:[%s1096_s1 + $0x40] sm:$0xff]   ;;  %v846_v28 = vld [vmem:[%s1096_s1 + $0x8] sm:$0xff]   ;;  %s868_s28 = smov 64   ;;  %v847_v33 = vld [vmem:[%s1096_s1 + $0x50] sm:$0xff]   ;;  %v696_v43 = vcombine.low %v941_v12, %v941_v12 }
   0x6   :  { %106 = vrot.lane.b32.xlu0 %v706_v4, %s866_s18  ;;  %v140_v22 = vrot.slane %v138_v11, 1  ;;  %v844_v24 = vld [vmem:[%s1096_s1] sm:$0xff]   ;;  %743 = vmatprep.subr.bf16.mxu0 %v843_v20  ;;  %v68_v27 = vshll.u32 %v699_v16, 16  ;;  %v66_v35 = vshrl.u32 %v699_v16, 16  ;;  %v848_v36 = vld [vmem:[%s1096_s1 + $0x10] sm:$0xff]   ;;  %v849_v38 = vld [vmem:[%s1096_s1 + $0x58] sm:$0xff]  }
   0x7   :  { %v128_v21 = vrot.slane %v126_v15, 1  ;;  %v56_v23 = vshll.u32 %v698_v17, 16  ;;  %744 = vmatpush3.bf16.msra.mxu0 %v844_v24  ;;  %v54_v30 = vshrl.u32 %v698_v17, 16  ;;  %s870_s11 = smov 96   ;;  %v850_v40 = vld [vmem:[%s1096_s1 + $0x18] sm:$0xff]   ;;  %v851_v42 = vld [vmem:[%s1096_s1 + $0x60] sm:$0xff]  }
   0x8   :  { %745 = vmatprep.subr.bf16.mxu0 %v845_v25  ;;  %v141_v32 = vor.u32 %v140_v22, %v136_v19  ;;  %v70_v37 = vrot.slane %v68_v27, 1  ;;  %v852_v44 = vld [vmem:[%s1096_s1 + $0x20] sm:$0xff]   ;;  %v853_v45 = vld [vmem:[%s1096_s1 + $0x68] sm:$0xff]   ;;  %v855_v49 = vld [vmem:[%s1096_s1 + $0x70] sm:$0xff]   ;;  %s872_s30 = smov 124   ;;  %vm83_vm3 = vcmask 785408  }
   0x9   :  { %v129_v26 = vor.u32 %v128_v21, %v124_v14  ;;  %v58_v31 = vrot.slane %v56_v23, 1  ;;  %v858_v46 = vld [vmem:[%s1096_s1 + $0x80] sm:$0xff]   ;;  %v854_v47 = vld [vmem:[%s1096_s1 + $0x28] sm:$0xff]   ;;  %v856_v50 = vld [vmem:[%s1096_s1 + $0x30] sm:$0xff]   ;;  %vm165_vm4 = vcmask 1043456   ;;  %vm500_vm5 = vcmask 64512  }
   0xa   :  { %111 = vrot.lane.b32.xlu0 %v707_v18, %s867_s27  ;;  %v71_v41 = vor.u32 %v70_v37, %v66_v35  ;;  %782 = vmatpush3.bf16.msra.mxu1 %v858_v46  ;;  %v860_v48 = vld [vmem:[%s1096_s1 + $0x88] sm:$0xff]   ;;  %v857_v51 = vld [vmem:[%s1096_s1 + $0x78] sm:$0xff]   ;;  %v861_v22 = vld [vmem:[%s1097_s4] sm:$0xff]  }
   0xb   :  { %130 = vrot.lane.b32.xlu1 %v129_v26, %s868_s28  ;;  %746 = vmatpush3.bf16.msra.mxu0 %v846_v28  ;;  %v59_v39 = vor.u32 %v58_v31, %v54_v30  ;;  %v859_v52 = vld [vmem:[%s1096_s1 + $0x38] sm:$0xff]   ;;  %v862_v24 = vld [vmem:[%s1097_s4 + $0x8] sm:$0xff]   ;;  %v863_v25 = vld [vmem:[%s1097_s4 + $0x10] sm:$0xff]  }
   0xc   :  { %747 = vmatprep.subr.bf16.mxu0 %v847_v33  ;;  %783 = vmatprep.subr.bf16.mxu1 %v869_v34  ;;  %v703_v58 = vld [vmem:[%s1095_s0 + $0x38] sm:$0xf]  ;;  %v731_v46 = vld [vmem:[%s1099_s5] ss:$0 sm:$0xff] }
   0xd   :  { %v693_v62 = vld [vmem:[%s1095_s0 + $0x18] sm:$0xf] }
   0xe   :  { %36 = vrot.lane.b32.xlu0 %v695_v29, %s866_s18  ;;  %784 = vmatpush3.bf16.msra.mxu1 %v860_v48  ;;  %v711_v29 = vld [vmem:[%s1098_s2] ss:$0 sm:$0xff] }
   0xf   :  { %142 = vrot.lane.b32.xlu1 %v141_v32, %s870_s11  ;;  %748 = vmatpush3.bf16.msra.mxu0 %v848_v36 }
  0x10   :  { %749 = vmatprep.subr.bf16.mxu0 %v849_v38  ;;  %789 = vmatprep.subr.bf16.mxu1 %v869_v34 }
  0x12   :  { %116 = vrot.lane.b32.xlu0 %v833_v0, %s870_s11 }
  0x13   :  { %60 = vrot.lane.b32.xlu1 %v59_v39, %s868_s28  ;;  %750 = vmatpush3.bf16.msra.mxu0 %v850_v40 }
  0x14   :  { %751 = vmatprep.subr.bf16.mxu0 %v851_v42 }
  0x16   :  { %72 = vrot.lane.b32.xlu0 %v71_v41, %s870_s11 }
  0x17   :  { %41 = vrot.lane.b32.xlu1 %v696_v43, %s867_s27  ;;  %752 = vmatpush3.bf16.msra.mxu0 %v852_v44 }
  0x18   :  { %753 = vmatprep.subr.bf16.mxu0 %v853_v45 }
  0x1a   :  { %144 = vrot.lane.b32.xlu0 %v129_v26, %s872_s30  ;;  %v864_v26 = vld [vmem:[%s1097_s4 + $0x18] sm:$0xff]  }
  0x1b   :  { %46 = vrot.lane.b32.xlu1 %v914_v1, %s870_s11  ;;  %754 = vmatpush3.bf16.msra.mxu0 %v854_v47 }
  0x1c   :  { %755 = vmatprep.subr.bf16.mxu0 %v855_v49 }
  0x1f   :  { %74 = vrot.lane.b32.xlu1 %v59_v39, %s872_s30  ;;  %756 = vmatpush3.bf16.msra.mxu0 %v856_v50 }
  0x20   :  { %757 = vmatprep.subr.bf16.mxu0 %v857_v51 }
  0x23   :  { %758 = vmatpush3.bf16.msra.mxu0 %v859_v52 }
  0x24   :  { %807 = vmatprep.subr.bf16.mxu0 %v869_v34 }
  0x74   :  { %v119_v53 = vpop.permute.xlu0 %118 }
  0x75   :  { %v49_v54 = vpop.permute.xlu1 %48  ;;  %v155_v61 = vsel %vm76_vm1, %v703_v58, %v119_v53 }
  0x76   :  { %v88_v4 = vsel %vm76_vm1, %v693_v62, %v49_v54 }
  0x78   :  { %v107_v55 = vpop.permute.xlu0 %106 }
  0x79   :  { %v148_v3 = vsel %vm76_vm1, %v925_v6, %v107_v55 }
  0x7c   :  { %v112_v56 = vpop.permute.xlu0 %111 }
  0x7d   :  { %v131_v57 = vpop.permute.xlu1 %130  ;;  %v150_v9 = vsel %vm80_vm2, %v148_v3, %v112_v56  ;;  %v496_v56 = vld [vmem:[%s1100_s3] sm:$0xf] }
  0x7e   :  { %v157_v63 = vsel %vm80_vm2, %v155_v61, %v131_v57  ;;  %v737_v57 = vld [vmem:[%s1100_s3 + $0x4] sm:$0xf] }
  0x80   :  { %v37_v59 = vpop.permute.xlu0 %36 }
  0x81   :  { %v143_v60 = vpop.permute.xlu1 %142  ;;  %v79_v6 = vsel %vm76_vm1, %v941_v12, %v37_v59 }
  0x82   :  { %v159_v1 = vsel %vm83_vm3, %v157_v63, %v143_v60 }
  0x83   :  { %v163_v5 = vrot.slane %v159_v1, 4 }
  0x84   :  { %v117_v0 = vpop.permute.xlu0 %116 }
  0x85   :  { %v61_v2 = vpop.permute.xlu1 %60  ;;  %v152_v13 = vsel %vm83_vm3, %v150_v9, %v117_v0 }
  0x86   :  { %v90_v7 = vsel %vm80_vm2, %v88_v4, %v61_v2  ;;  %v162_v16 = vrot.slane %v152_v13, 4 }
  0x88   :  { %v73_v8 = vpop.permute.xlu0 %72 }
  0x89   :  { %v42_v10 = vpop.permute.xlu1 %41  ;;  %v92_v11 = vsel %vm83_vm3, %v90_v7, %v73_v8 }
  0x8a   :  { %v170_v14 = vsel %vm165_vm4, %v92_v11, %v163_v5  ;;  %v82_v17 = vsel %vm80_vm2, %v79_v6, %v42_v10 }
  0x8b   :  { %360 = vmatprep.mubr.bf16.mxu0 %v170_v14 }
  0x8c   :  { %v145_v15 = vpop.permute.xlu0 %144 }
  0x8d   :  { %v47_v18 = vpop.permute.xlu1 %46  ;;  %v164_v20 = vrot.slane %v145_v15, 4 }
  0x8e   :  { %v85_v19 = vsel %vm83_vm3, %v82_v17, %v47_v18 }
  0x8f   :  { %v167_v21 = vsel %vm165_vm4, %v85_v19, %v162_v16 }
  0x90   :  { %361 = vmatmul.mubr.bf16.vlgmr.msra.gmra.mrb[0].mxu0 %v167_v21 }
  0x91   :  { %v75_v23 = vpop.permute.xlu1 %74  ;;  %809 = vmatprep.mubr.msk.bf16.mxu0 %vm871_vm0, %v869_v34 }
  0x92   :  { %v174_v12 = vsel %vm165_vm4, %v75_v23, %v164_v20 }
  0x93   :  { %786 = vmatmul.mubr.msk.bf16.vlgmr.msra.gmra.mrb[0].mxu1 %vm76_vm1, %v174_v12 }
  0x94   :  { %790 = vmatpush3.bf16.msra.mxu1 %v861_v22  ;;  %797 = vmatprep.mubr.msk.bf16.mxu1 %vm871_vm0, %v869_v34 }
  0x95   :  { %791 = vmatprep.subr.bf16.mxu1 %v869_v34 }
  0x98   :  { %792 = vmatpush3.bf16.msra.mxu1 %v862_v24 }
  0x99   :  { %793 = vmatprep.subr.bf16.mxu1 %v869_v34 }
  0x9c   :  { %794 = vmatpush3.bf16.msra.mxu1 %v863_v25 }
  0x9d   :  { %795 = vmatprep.subr.bf16.mxu1 %v869_v34 }
  0xa0   :  { %796 = vmatpush3.bf16.msra.mxu1 %v864_v26 }
  0xa1   :  { %801 = vmatprep.subr.bf16.mxu1 %v869_v34 }
 0x163   :  { %v759_v27 = vpop.f32.mrb[0].mxu0 }
 0x164   :  { %v760_v28 = vpop.f32.mrb[1].mxu0 }
 0x165   :  { %v761_v30 = vadd.f32 %v760_v28, %v759_v27  ;;  %v762_v31 = vpop.f32.mrb[2].mxu0 }
 0x166   :  { %v763_v32 = vpop.f32.mrb[3].mxu0  ;;  %v403_v33 = vpop.f32.mrb[0].mxu1 }
 0x167   :  { %v764_v35 = vadd.f32 %v763_v32, %v762_v31  ;;  %v363_v36 = vadd.f32 %v761_v30, %v711_v29  ;;  %v787_v37 = vpop.f32.mrb[1].mxu1 }
 0x168   :  { %v406_v38 = vpop.f32.mrb[2].mxu1 }
 0x169   :  { %v404_v39 = vadd.f32 %v403_v33, %v363_v36  ;;  %v366_v40 = vadd.f32 %v764_v35, %v711_v29  ;;  %v788_v41 = vpop.f32.mrb[3].mxu1 }
 0x16b   :  { %v407_v42 = vadd.f32 %v406_v38, %v366_v40  ;;  %v410_v43 = vmax.f32 %v404_v39, 0.0 }
 0x16d   :  { %v411_v44 = vmax.f32 %v407_v42, 0.0 }
 0x16f   :  { %v412_v45 = vpack.c.bf16 %v411_v44, %v410_v43 }
 0x171   :  { %798 = vmatmul.mubr.msk.bf16.vlgmr.msra.gmra.mrb[4].mxu1 %vm80_vm2, %v412_v45 }
 0x172   :  { %803 = vmatprep.mubr.msk.bf16.mxu1 %vm871_vm0, %v869_v34 }
 0x244   :  { %v489_v47 = vpop.f32.mrb[4].mxu1 }
 0x245   :  { %v490_v48 = vadd.f32 %v731_v46, %v489_v47  ;;  %v799_v49 = vpop.f32.mrb[5].mxu1 }
 0x246   :  { %v492_v50 = vpop.f32.mrb[6].mxu1 }
 0x247   :  { %v499_v51 = vpack.c.bf16 %v490_v48, %v490_v48  ;;  %v493_v52 = vadd.f32 %v731_v46, %v492_v50  ;;  %v800_v53 = vpop.f32.mrb[7].mxu1 }
 0x249   :  { %v505_v54 = vsel %vm165_vm4, %v499_v51, 0  ;;  %v596_v55 = vpack.c.bf16 %v493_v52, %v493_v52 }
 0x24a   :  { %802 = vmatpush3.bf16.msra.mxu1 %v505_v54  ;;  %808 = vmatpush3.bf16.msra.mxu0 %v505_v54 }
 0x24b   :  { %813 = vmatprep.subr.bf16.mxu1 %v869_v34  ;;  %819 = vmatprep.subr.bf16.mxu0 %v869_v34  ;;  %v598_v58 = vsel %vm165_vm4, %v596_v55, 0 }
 0x24d   :  { %804 = vmatmul.mubr.msk.bf16.vlgmr.msra.gmra.mrb[8].mxu1 %vm500_vm5, %v496_v56  ;;  %810 = vmatmul.mubr.msk.bf16.vlgmr.msra.gmra.mrb[4].mxu0 %vm500_vm5, %v737_v57 }
 0x24e   :  { %814 = vmatpush3.bf16.msra.mxu1 %v598_v58  ;;  %820 = vmatpush3.bf16.msra.mxu0 %v598_v58 }
 0x24f   :  { %821 = vmatprep.mubr.msk.bf16.mxu0 %vm871_vm0, %v869_v34  ;;  %815 = vmatprep.mubr.msk.bf16.mxu1 %vm871_vm0, %v869_v34 }
 0x255   :  { %822 = vmatmul.mubr.msk.bf16.vlgmr.msra.gmra.mrb[8].mxu0 %vm500_vm5, %v737_v57  ;;  %816 = vmatmul.mubr.msk.bf16.vlgmr.msra.gmra.mrb[12].mxu1 %vm500_vm5, %v496_v56 }
 0x320   :  { %v584_v59 = vpop.f32.mrb[4].mxu0  ;;  %v541_v60 = vpop.f32.mrb[8].mxu1 }
 0x321   :  { %v811_v61 = vpop.f32.mrb[5].mxu0  ;;  %591 = vrot.lane.b32.xlu0 %v584_v59, %s868_s28  ;;  %v805_v62 = vpop.f32.mrb[9].mxu1 }
 0x322   :  { %v587_v63 = vpop.f32.mrb[6].mxu0  ;;  %v544_v0 = vpop.f32.mrb[10].mxu1 }
 0x323   :  { %v812_v1 = vpop.f32.mrb[7].mxu0  ;;  %v806_v2 = vpop.f32.mrb[11].mxu1 }
 0x328   :  { %v674_v3 = vpop.f32.mrb[8].mxu0  ;;  %v634_v4 = vpop.f32.mrb[12].mxu1 }
 0x329   :  { %v823_v5 = vpop.f32.mrb[9].mxu0  ;;  %681 = vrot.lane.b32.xlu1 %v674_v3, %s868_s28  ;;  %v817_v7 = vpop.f32.mrb[13].mxu1 }
 0x32a   :  { %v677_v8 = vpop.f32.mrb[10].mxu0  ;;  %v637_v34 = vpop.f32.mrb[14].mxu1 }
 0x32b   :  { %v824_v9 = vpop.f32.mrb[11].mxu0  ;;  %v818_v10 = vpop.f32.mrb[15].mxu1 }
 0x393   :  { %v592_v11 = vpop.permute.xlu0 %591 }
 0x394   :  { %v594_v13 = vsel %vm80_vm2, %v541_v60, %v592_v11 }
 0x395   :  { %595 = vst [vmem:[%s1101_s6] sm:$0xff] %v594_v13 }
 0x39b   :  { %v682_v14 = vpop.permute.xlu1 %681 }
 0x39c   :  { %v684_v6 = vsel %vm80_vm2, %v634_v4, %v682_v14 }
 0x39d   :  { %742 = vst [vmem:[%s1101_s6 + $0x8] sm:$0xff] %v684_v6 }

</bundles_post_ra>
